<compile_context>
chip_gen: v7x
topology: tpu7x:2x2x1
jax: 0.10.0
libtpu: 0.0.40
codegen_flags: <defaults>
</compile_context>

<pallas_src>
import math
import functools

import jax
import jax.numpy as jnp
from jax.experimental import pallas as pl
from jax.experimental.pallas import tpu as pltpu


# ---------------------------------------------------------------------------
# In-kernel sinusoidal PE generation (matches the PyTorch buffer construction)
# ---------------------------------------------------------------------------
def _pe_block(block_shape, d_model, seq_start):
    """PE values for a (rows, batch*d_model) block starting at sequence index
    `seq_start`.  Column c maps to embed dim d = c % d_model (batch-broadcast)."""
    rows, cols = block_shape
    row = jax.lax.broadcasted_iota(jnp.int32, (rows, cols), 0)
    lane = jax.lax.broadcasted_iota(jnp.int32, (rows, cols), 1)

    if (d_model & (d_model - 1)) == 0:          # power of two: cheap bit-and
        d = jnp.bitwise_and(lane, d_model - 1)
    else:
        d = lane % d_model
    parity = jnp.bitwise_and(d, 1)              # 0 -> sin, 1 -> cos
    two_i = (d - parity).astype(jnp.float32)    # 2 * (d // 2)

    pos = (seq_start + row).astype(jnp.float32)
    freq = jnp.exp(two_i * jnp.float32(-math.log(10000.0) / d_model))
    angle = pos * freq
    return jnp.where(parity == 0, jnp.sin(angle), jnp.cos(angle))


# ---------------------------------------------------------------------------
# Kernels
# ---------------------------------------------------------------------------
def _posenc_kernel_eval(x_ref, o_ref, *, d_model):
    rows, cols = x_ref.shape
    seq_start = pl.program_id(0) * rows
    pe = _pe_block((rows, cols), d_model, seq_start)
    o_ref[...] = (x_ref[...].astype(jnp.float32) + pe).astype(o_ref.dtype)


def _posenc_kernel_train(x_ref, bits_ref, o_ref, *, d_model, p):
    rows, cols = x_ref.shape
    seq_start = pl.program_id(0) * rows
    pe = _pe_block((rows, cols), d_model, seq_start)
    y = x_ref[...].astype(jnp.float32) + pe
    # Inverted dropout: integer-threshold compare on the top 24 random bits.
    threshold = jnp.uint32(int(round(p * (1 << 24))))
    keep = (bits_ref[...] >> jnp.uint32(8)) >= threshold
    scale = jnp.float32(1.0 / (1.0 - p))
    o_ref[...] = jnp.where(keep, y * scale, 0.0).astype(o_ref.dtype)


# ---------------------------------------------------------------------------
# Reference buffer construction (matches the PyTorch __init__ exactly)
# ---------------------------------------------------------------------------
def make_positional_encoding_table(d_model, max_len=5000, dtype=jnp.float32):
    position = jnp.arange(max_len, dtype=jnp.float32)[:, None]            # (L, 1)
    div_term = jnp.exp(
        jnp.arange(0, d_model, 2, dtype=jnp.float32)
        * (-math.log(10000.0) / d_model)
    )                                                                     # (D/2,)
    angles = position * div_term                                          # (L, D/2)
    pe = jnp.zeros((max_len, d_model), dtype=jnp.float32)
    pe = pe.at[:, 0::2].set(jnp.sin(angles))
    pe = pe.at[:, 1::2].set(jnp.cos(angles))
    return pe[:, None, :].astype(dtype)                                   # (L, 1, D)


# ---------------------------------------------------------------------------
# Wrapper (forward pass)
# ---------------------------------------------------------------------------
def _pick_block_rows(seq_len, row_bytes, target_bytes=2 * 1024 * 1024):
    rows = max(1, target_bytes // max(1, row_bytes))
    if rows >= seq_len:
        return seq_len
    return max(8, (rows // 8) * 8)


def positional_encoding_forward(x, *, dropout_p=0.1, train=False, rng_key=None,
                                block_rows=None):
    """x: (seq_len, batch, d_model) -> (seq_len, batch, d_model)."""
    S, B, D = x.shape
    BD = B * D
    x2 = x.reshape(S, BD)                      # free, contiguous reshape

    itemsize = jnp.dtype(x.dtype).itemsize
    ts = block_rows if block_rows is not None else _pick_block_rows(S, BD * itemsize)
    if ts >= S:
        ts = S                                 # full extent: no (8,128) constraint
    elif ts % 8 != 0:
        ts = max(8, (ts // 8) * 8)             # keep sublane-aligned tiles
    grid = (pl.cdiv(S, ts),)

    cparams = pltpu.CompilerParams(dimension_semantics=("parallel",))

    if (not train) or dropout_p == 0.0:
        kernel = functools.partial(_posenc_kernel_eval, d_model=D)
        out2 = pl.pallas_call(
            kernel,
            out_shape=jax.ShapeDtypeStruct((S, BD), x.dtype),
            grid=grid,
            in_specs=[pl.BlockSpec((ts, BD), lambda i: (i, 0))],
            out_specs=pl.BlockSpec((ts, BD), lambda i: (i, 0)),
            compiler_params=cparams,
        )(x2)
        return out2.reshape(S, B, D)

    # Training mode: stochastic inverted dropout (random stream differs from torch).
    if rng_key is None:
        rng_key = jax.random.PRNGKey(0)
    bits = jax.random.bits(rng_key, (S, BD), dtype=jnp.uint32)
    kernel = functools.partial(_posenc_kernel_train, d_model=D, p=float(dropout_p))
    out2 = pl.pallas_call(
        kernel,
        out_shape=jax.ShapeDtypeStruct((S, BD), x.dtype),
        grid=grid,
        in_specs=[pl.BlockSpec((ts, BD), lambda i: (i, 0)),
                  pl.BlockSpec((ts, BD), lambda i: (i, 0))],
        out_specs=pl.BlockSpec((ts, BD), lambda i: (i, 0)),
        compiler_params=cparams,
    )(x2, bits)
    return out2.reshape(S, B, D)


# ---------------------------------------------------------------------------
# Demo / self-test
# ---------------------------------------------------------------------------
if __name__ == "__main__":
    d_model, seq_len, batch = 32, 8, 2
    drop_p = 0.1

    key = jax.random.PRNGKey(0)
    kx, k2 = jax.random.split(key)
    x = jax.random.normal(kx, (seq_len, batch, d_model), dtype=jnp.float32)

    pe_table = make_positional_encoding_table(d_model)          # (5000, 1, D)

    # 1) Eval mode (dropout = identity): exact forward semantics.
    out = jax.block_until_ready(
        positional_encoding_forward(x, dropout_p=drop_p, train=False))
    ref = x + pe_table[:seq_len]
    assert out.shape == (seq_len, batch, d_model)
    assert out.dtype == x.dtype
    assert jnp.allclose(out, ref, atol=1e-4, rtol=1e-5), float(jnp.max(jnp.abs(out - ref)))

    # 2) Multi-block grid with a ragged trailing tile (exercises pl.cdiv tiling).
    S2 = 200
    x_big = jax.random.normal(k2, (S2, batch, d_model), dtype=jnp.float32)
    out_big = jax.block_until_ready(
        positional_encoding_forward(x_big, dropout_p=drop_p, train=False,
                                    block_rows=64))
    ref_big = x_big + pe_table[:S2]
    assert jnp.allclose(out_big, ref_big, atol=1e-4, rtol=1e-5)

    # 3) Training mode: every output element is either 0 or (x+pe)/(1-p).
    out_tr = jax.block_until_ready(
        positional_encoding_forward(x, dropout_p=drop_p, train=True,
                                    rng_key=jax.random.PRNGKey(1)))
    scaled = ref / (1.0 - drop_p)
    ok = (out_tr == 0.0) | (jnp.abs(out_tr - scaled) <= 1e-4 + 1e-5 * jnp.abs(scaled))
    assert out_tr.shape == x.shape and bool(jnp.all(ok))

    print("KERNEL_OK")
</pallas_src>

<mosaic_0001>
module attributes {stable_mosaic.version = 11 : i64} {
  func.func @_posenc_kernel_eval(%arg0: i32, %arg1: memref<8x64xf32, #tpu.memory_space<vmem>>, %arg2: memref<8x64xf32, #tpu.memory_space<vmem>>) attributes {dimension_semantics = [#tpu.dimension_semantics<parallel>], iteration_bounds = array<i64: 1>, scalar_prefetch = 0 : i64, scratch_operands = 0 : i64, tpu.core_type = #tpu.core_type<tc>, window_params = [{transform_indices = @transform_0, window_bounds = array<i64: 8, 64>}, {transform_indices = @transform_1, window_bounds = array<i64: 8, 64>}]} {
    %c8_i32 = arith.constant 8 : i32
    %0 = arith.muli %arg0, %c8_i32 : i32
    %1 = tpu.iota {dimensions = array<i32: 0>} : vector<8x64xi32>
    %2 = tpu.iota {dimensions = array<i32: 1>} : vector<8x64xi32>
    %c31_i32 = arith.constant 31 : i32
    %3 = vector.broadcast %c31_i32 : i32 to vector<8x64xi32>
    %4 = arith.andi %2, %3 : vector<8x64xi32>
    %c1_i32 = arith.constant 1 : i32
    %5 = vector.broadcast %c1_i32 : i32 to vector<8x64xi32>
    %6 = arith.andi %4, %5 : vector<8x64xi32>
    %7 = arith.subi %4, %6 : vector<8x64xi32>
    %8 = arith.sitofp %7 : vector<8x64xi32> to vector<8x64xf32>
    %9 = vector.broadcast %0 : i32 to vector<8x64xi32>
    %10 = arith.addi %9, %1 : vector<8x64xi32>
    %11 = arith.sitofp %10 : vector<8x64xi32> to vector<8x64xf32>
    %cst = arith.constant -0.287823141 : f32
    %12 = vector.broadcast %cst : f32 to vector<8x64xf32>
    %13 = arith.mulf %8, %12 : vector<8x64xf32>
    %14 = math.exp %13 : vector<8x64xf32>
    %15 = arith.mulf %11, %14 : vector<8x64xf32>
    %c0_i32 = arith.constant 0 : i32
    %16 = vector.broadcast %c0_i32 : i32 to vector<8x64xi32>
    %17 = arith.cmpi eq, %6, %16 : vector<8x64xi32>
    %18 = math.sin %15 : vector<8x64xf32>
    %19 = math.cos %15 : vector<8x64xf32>
    %20 = arith.select %17, %18, %19 : vector<8x64xi1>, vector<8x64xf32>
    %c0 = arith.constant 0 : index
    %c0_0 = arith.constant 0 : index
    %21 = vector.load %arg1[%c0, %c0_0] : memref<8x64xf32, #tpu.memory_space<vmem>>, vector<8x64xf32>
    %22 = arith.addf %21, %20 : vector<8x64xf32>
    %c0_1 = arith.constant 0 : index
    %c0_2 = arith.constant 0 : index
    %23 = vector.load %arg2[%c0_1, %c0_2] : memref<8x64xf32, #tpu.memory_space<vmem>>, vector<8x64xf32>
    tpu.vector_store %arg2[%c0_1, %c0_2], %22 {strides = array<i32>} : memref<8x64xf32, #tpu.memory_space<vmem>>, vector<8x64xf32>,
    return
  }
  func.func @transform_0(%arg0: i32) -> (i32, i32) {
    %c0_i32 = arith.constant 0 : i32
    %c0_i32_0 = arith.constant 0 : i32
    return %arg0, %c0_i32 : i32, i32
  }
  func.func @transform_1(%arg0: i32) -> (i32, i32) {
    %c0_i32 = arith.constant 0 : i32
    %c0_i32_0 = arith.constant 0 : i32
    return %arg0, %c0_i32 : i32, i32
  }
}

</mosaic_0001>

<bundles_post_ra>
// kernel: tpu_custom_call.1
= control target key start
LH: loop header
LB: loop body
LE: loop exit
PB: predicated region body
PF: predicated region fallthrough
CT: control target
= control target key end

     0   :  { %6 = vsyncpa [#allocation3], 0  ;;  %s406_s0 = inlined_call_operand.hbm [shape: f32[8,64], index: 0, kind: input, shape index: {}]   ;;  %s407_s1 = inlined_call_operand.hbm [shape: f32[8,64], index: 1, kind: output, shape index: {}]  }
   0x1   :  { %7 = vsyncpa [#allocation4], 0  ;;  %s339_s6 = smov [#allocation2]   ;;  %s291_s10 = scalar_lea.hbm %s406_s0, 128 }
   0x2   :  { %s14_s7 = sshll.u32 %s339_s6, 4  ;;  %p292_p0 = scmp.ne.s32.totalorder %s406_s0, %s291_s10  ;;  %s15_s7 = int_to_ptr.vmem [resolvable:$true] %s14_s7 }
   0x3   :  { %p295_p1 = scmp.lt.u32.totalorder %s291_s10, %s406_s0 }
   0x5   :  { %p297_p2 = pnand %p295_p1, %p292_p0 }
   0x7   :  { %300 = shalt.err (!%p297_p2)
}
   0x8   :  { %s301_s15 = scalar_lea.vmem %s15_s7, 128  ;;  %p306_p4 = scmp.lt.s32.totalorder %s15_s7, %s15_s7 }
   0x9   :  { %p302_p3 = scmp.ne.s32.totalorder %s15_s7, %s301_s15  ;;  %p307_p5 = scmp.lt.s32.totalorder %s301_s15, %s301_s15 }
   0xb   :  { %p308_p6 = por %p307_p5, %p306_p4 }
   0xd   :  { %p309_p7 = pnand %p308_p6, %p302_p3 }
   0xf   :  { %312 = shalt.err (!%p309_p7)
}
  0x10   :  { %17 = dma.hbm_to_vmem [thread:$0]  %s406_s0, 128, %s15_s7, [#allocation3]  }
  0x11   :  { %335 = dma.done.wait [#allocation3], 128  }
  0x12   :  { %336 = vsyncadd [#allocation3], 4294967168  ;;  %v22_v0 = vlaneseq  ;;  %v340_v23 = vmov 683565275   ;;  %v341_v25 = vmov 2475754826  }
  0x13   :  { %v342_v27 = vmov 2131351028   ;;  %v343_v29 = vmov 2102212464   ;;  %v344_v31 = vmov 920167782  }
  0x14   :  { %v25_v1 = vand.u32 127, %v22_v0  ;;  %v23_v8 = vshrl.u32 %v22_v0, 7  ;;  %v345_v38 = vmov 1326507024   ;;  %s346_s0 = smov [#allocation5]  }
  0x15   :  { %s256_s18 = sshll.u32 %s346_s0, 4  ;;  %s257_s18 = int_to_ptr.vmem [resolvable:$true] %s256_s18 }
  0x16   :  { %v26_v2 = vand.u32 31, %v25_v1  ;;  %v32_v9 = vcvt.s32.f32 %v23_v8  ;;  %s313_s19 = scalar_lea.vmem %s257_s18, 128  ;;  %p318_p9 = scmp.lt.s32.totalorder %s257_s18, %s257_s18 }
  0x17   :  { %p314_p8 = scmp.ne.s32.totalorder %s257_s18, %s313_s19  ;;  %p319_p10 = scmp.lt.s32.totalorder %s313_s19, %s313_s19 }
  0x18   :  { %v369_v3 = vand.u32 1, %v26_v2 }
  0x19   :  { %p320_p11 = por %p319_p10, %p318_p9 }
  0x1a   :  { %v28_v4 = vsub.s32 %v26_v2, %v369_v3 }
  0x1b   :  { %p321_p12 = pnand %p320_p11, %p314_p8 }
  0x1c   :  { %v29_v5 = vcvt.s32.f32 %v28_v4 }
  0x1e   :  { %v33_v6 = vmul.f32 -0.28782314, %v29_v5 }
  0x20   :  { %v34_v7 = vmul.f32 1.442695, %v33_v6 }
  0x22   :  { %285 = vpow2.f32 %v34_v7 }
  0x2c   :  { %v286_v10 = vpop.eup %285 }
  0x2d   :  { %v372_v11 = vmul.f32 %v286_v10, %v32_v9 }
  0x2f   :  { %v41_v12 = vand.u32 2139095040, %v372_v11  ;;  %v38_v14 = vand.u32 2147483647, %v372_v11  ;;  %vm40_vm7 = vcmp.lt.s32.totalorder %v372_v11, 0  ;;  %vm130_vm15 = vweird.f32 %v372_v11 }
  0x31   :  { %v42_v13 = vshrl.u32 %v41_v12, 23  ;;  %v45_v17 = vand.u32 8388607, %v38_v14  ;;  %vm39_vm8 = vcmp.le.f32.partialorder %v38_v14, 0.7853982 }
  0x33   :  { %v265_v15 = vadd.s32 4294967169, %v42_v13  ;;  %v46_v20 = vor.u32 8388608, %v45_v17 }
  0x35   :  { %v48_v16 = vadd.s32 1, %v265_v15  ;;  %v86_v40 = vshll.u32 %v46_v20, 8 }
  0x37   :  { %vm49_vm0 = vcmp.gt.s32.totalorder %v48_v16, 0 }
  0x38   :  { %v50_v18 = vsel %vm49_vm0, %v48_v16, 0  ;;  %vm37_vm0 = vcmp.eq.s32.totalorder %v369_v3, 0 }
  0x39   :  { %v52_v19 = vand.u32 31, %v50_v18  ;;  %v51_v21 = vshrl.u32 %v50_v18, 5 }
  0x3b   :  { %v53_v22 = vsub.s32 32, %v52_v19  ;;  %v55_v24 = vshll.u32 %v340_v23, %v52_v19  ;;  %v58_v26 = vshll.u32 %v341_v25, %v52_v19  ;;  %v61_v28 = vshll.u32 %v342_v27, %v52_v19 }
  0x3c   :  { %v64_v30 = vshll.u32 %v343_v29, %v52_v19  ;;  %v67_v32 = vshll.u32 %v344_v31, %v52_v19  ;;  %vm70_vm1 = vcmp.lt.s32.totalorder %v51_v21, 1  ;;  %vm73_vm2 = vcmp.lt.s32.totalorder %v51_v21, 4 }
  0x3d   :  { %v54_v33 = vshrl.u32 %v340_v23, %v53_v22  ;;  %v56_v34 = vshrl.u32 %v341_v25, %v53_v22  ;;  %v59_v35 = vshrl.u32 %v342_v27, %v53_v22  ;;  %v62_v36 = vshrl.u32 %v343_v29, %v53_v22 }
  0x3e   :  { %v65_v37 = vshrl.u32 %v344_v31, %v53_v22  ;;  %v68_v39 = vshrl.u32 %v345_v38, %v53_v22  ;;  %vm71_vm3 = vcmp.lt.s32.totalorder %v51_v21, 2  ;;  %vm72_vm4 = vcmp.lt.s32.totalorder %v51_v21, 3 }
  0x3f   :  { %v57_v41 = vor.u32 %v56_v34, %v55_v24  ;;  %v60_v42 = vor.u32 %v59_v35, %v58_v26  ;;  %v63_v43 = vor.u32 %v62_v36, %v61_v28 }
  0x40   :  { %v66_v44 = vor.u32 %v65_v37, %v64_v30  ;;  %v69_v45 = vor.u32 %v68_v39, %v67_v32 }
  0x41   :  { %v74_v46 = vsel %vm70_vm1, %v54_v33, %v57_v41  ;;  %v75_v47 = vsel %vm73_vm2, %v63_v43, 2102212464  ;;  %v78_v48 = vsel %vm70_vm1, %v57_v41, %v60_v42  ;;  %v82_v49 = vsel %vm70_vm1, %v60_v42, %v63_v43 }
  0x42   :  { %v76_v50 = vsel %vm72_vm4, %v60_v42, %v75_v47  ;;  %v79_v51 = vsel %vm73_vm2, %v66_v44, 920167782  ;;  %v83_v52 = vsel %vm73_vm2, %v69_v45, 1326507024  ;;  %vm248_vm1 = vcmask 523264  }
  0x43   :  { %v80_v53 = vsel %vm72_vm4, %v63_v43, %v79_v51  ;;  %v84_v54 = vsel %vm72_vm4, %v66_v44, %v83_v52  ;;  %v77_v55 = vsel %vm71_vm3, %v74_v46, %v76_v50  ;;  %v246_v44 = vld [vmem:[#allocation2] sm:$0xff] }
  0x44   :  { %v81_v56 = vsel %vm71_vm3, %v78_v48, %v80_v53  ;;  %v85_v57 = vsel %vm71_vm3, %v82_v49, %v84_v54  ;;  %v93_v62 = vmul.u32 %v86_v40, %v77_v55 }
  0x45   :  { %v378_v58 = vmul.u32.u64.low %v86_v40, %v85_v57  ;;  %v379_v59 = vmul.u32.u64.high %v86_v40, %v85_v57, %v378_v58  ;;  %v381_v60 = vmul.u32.u64.low %v86_v40, %v81_v56  ;;  %v382_v61 = vmul.u32.u64.high %v86_v40, %v81_v56, %v381_v60 }
  0x47   :  { %vm95_vm5 = vc.u32 %v379_v59, %v381_v60  ;;  %v96_v63 = vadd.s32 1, %v382_v61  ;;  %v94_v12 = vadd.s32 %v381_v60, %v379_v59 }
  0x49   :  { %v97_v0 = vsel %vm95_vm5, %v96_v63, %v382_v61 }
  0x4a   :  { %v98_v1 = vadd.s32 %v97_v0, %v93_v62 }
  0x4c   :  { %v99_v2 = vadd.s32 536870912, %v98_v1 }
  0x4e   :  { %v100_v4 = vshrl.u32 %v99_v2, 30 }
  0x50   :  { %v101_v5 = vshll.u32 %v100_v4, 30  ;;  %v124_v25 = vsub.s32 4, %v100_v4 }
  0x52   :  { %v102_v6 = vsub.s32 %v98_v1, %v101_v5  ;;  %v125_v28 = vsel %vm40_vm7, %v124_v25, %v100_v4 }
  0x53   :  { %v127_v31 = vsel %vm39_vm8, 0, %v125_v28 }
  0x54   :  { %v104_v7 = vsub.s32 0, %v102_v6  ;;  %v131_v32 = vadd.s32 3, %v127_v31  ;;  %v235_v34 = vand.u32 3, %v127_v31 }
  0x56   :  { %v266_v8 = vmin.u32 %v104_v7, %v102_v6  ;;  %v132_v33 = vand.u32 3, %v131_v32  ;;  %vm240_vm10 = vcmp.eq.s32.totalorder %v235_v34, 2  ;;  %vm237_vm12 = vcmp.eq.s32.totalorder %v235_v34, 0 }
  0x57   :  { %vm236_vm14 = vcmp.lt.s32.totalorder %v235_v34, 2 }
  0x58   :  { %v106_v9 = vclz %v266_v8  ;;  %vm137_vm9 = vcmp.eq.s32.totalorder %v132_v33, 2  ;;  %vm134_vm11 = vcmp.eq.s32.totalorder %v132_v33, 0  ;;  %vm133_vm13 = vcmp.lt.s32.totalorder %v132_v33, 2 }
  0x5a   :  { %v267_v10 = vadd.s32 4294967294, %v106_v9 }
  0x5c   :  { %vm268_vm6 = vcmp.lt.s32.totalorder %v267_v10, 0 }
  0x5d   :  { %v109_v13 = vsel %vm268_vm6, 0, %v267_v10 }
  0x5e   :  { %v110_v15 = vsub.s32 32, %v109_v13  ;;  %v111_v16 = vshll.u32 %v102_v6, %v109_v13  ;;  %v114_v17 = vsub.s32 4294967266, %v109_v13 }
  0x60   :  { %v112_v18 = vshrl.u32 %v94_v12, %v110_v15  ;;  %v115_v19 = vadd.s32 127, %v114_v17 }
  0x62   :  { %v113_v20 = vor.u32 %v112_v18, %v111_v16  ;;  %v116_v21 = vshll.u32 %v115_v19, 23 }
  0x64   :  { %v117_v22 = vor.u32 4788187, %v116_v21  ;;  %v120_v23 = vcvt.s32.f32 %v113_v20 }
  0x66   :  { %v118_v24 = vand.u32 2147483647, %v117_v22 }
  0x68   :  { %v121_v26 = vmul.f32 %v120_v23, %v118_v24 }
  0x6a   :  { %v122_v27 = vxor.u32 2147483648, %v121_v26 }
  0x6c   :  { %v123_v29 = vsel %vm40_vm7, %v122_v27, %v121_v26 }
  0x6d   :  { %v126_v30 = vsel %vm39_vm8, %v372_v11, %v123_v29 }
  0x6e   :  { %287 = vcosq.f32 %v126_v30 }
  0x6f   :  { %289 = vsinq.f32 %v126_v30 }
  0x78   :  { %v288_v35 = vpop.eup %287 }
  0x79   :  { %v290_v36 = vpop.eup %289  ;;  %v138_v37 = vxor.u32 2147483648, %v288_v35 }
  0x7a   :  { %v135_v14 = vxor.u32 2147483648, %v290_v36 }
  0x7b   :  { %v139_v38 = vsel %vm137_vm9, %v138_v37, %v290_v36  ;;  %v242_v39 = vsel %vm240_vm10, %v138_v37, %v290_v36 }
  0x7c   :  { %v136_v40 = vsel %vm134_vm11, %v288_v35, %v135_v14  ;;  %v239_v41 = vsel %vm237_vm12, %v288_v35, %v135_v14 }
  0x7d   :  { %v140_v42 = vsel %vm133_vm13, %v136_v40, %v139_v38  ;;  %v243_v43 = vsel %vm236_vm14, %v239_v41, %v242_v39 }
  0x7e   :  { %v141_v45 = vsel %vm130_vm15, nan, %v140_v42  ;;  %v244_v46 = vsel %vm130_vm15, nan, %v243_v43 }
  0x7f   :  { %v245_v47 = vsel %vm37_vm0, %v141_v45, %v244_v46 }
  0x80   :  { %v247_v48 = vadd.f32 %v246_v44, %v245_v47 }
  0x82   :  { %249 = vst.msk [vmem:[#allocation5] sm:$0xff] %vm248_vm1, %v247_v48 }
  0x83   :  { %324 = shalt.err (!%p321_p12)
}
  0x84   :  { %s325_s22 = scalar_lea.hbm %s407_s1, 128 }
  0x85   :  { %p326_p13 = scmp.ne.s32.totalorder %s407_s1, %s325_s22  ;;  %p329_p0 = scmp.lt.u32.totalorder %s325_s22, %s407_s1 }
  0x87   :  { %p331_p1 = pnand %p329_p0, %p326_p13 }
  0x89   :  { %334 = shalt.err (!%p331_p1)
}
  0x8a   :  { %259 = dma.vmem_to_hbm [thread:$0]  %s257_s18, 128, %s407_s1, [#allocation4]  }
  0x8b   :  { %337 = dma.done.wait [#allocation4], 128  }
  0x8c   :  { %338 = vsyncadd [#allocation4], 4294967168 }
  0x8d   :  { %263 = vsyncpa [#allocation3], 1 }
  0x8e   :  { %264 = vsyncpa [#allocation4], 1 }

</bundles_post_ra>
